<compile_context>
chip_gen: v6e
topology: v6e:2x2x1
jax: 0.10.0
libtpu: 0.0.40
codegen_flags: <defaults>
</compile_context>

<pallas_src>
import functools

import jax
import jax.numpy as jnp
from jax.experimental import pallas as pl
from jax.experimental.pallas import tpu as pltpu

LANE = 128        # lane width: last dim of every block padded to this
SUBLANE = 16      # bf16 packs 2 rows per sublane -> pad batch to 16, not 8
TILE_M_MAX = 512  # measured knee: 256-wide tiles ~63% of HBM roofline, 512 ~85%


def _round_up(n, m):
    return ((n + m - 1) // m) * m


def _tpu_vmem_capacity_bytes():
    """Physical VMEM per TensorCore (128 MiB v5e/v6e, 64 MiB v7x)."""
    try:
        return int(pltpu.get_tpu_info().vmem_capacity_bytes)
    except Exception:
        return 128 << 20


def _tensorcores_per_chip():
    """TensorCores the 'parallel' grid axis can shard across (2 on v7x/megacore)."""
    try:
        kind = jax.devices()[0].device_kind.lower()
    except Exception:
        return 1
    return 2 if any(t in kind for t in ("v7", "v5p", "v4")) else 1


def _fused_mlp_kernel(x_ref, *refs, num_layers):
    """Fused MLP on one (tile_m, feat) batch tile.

    refs = (w_0..w_{L-1}, b_0..b_{L-1}, out_ref); weights are (in_pad, out_pad)
    bf16, biases are (1, out_pad) f32.
    """
    w_refs = refs[:num_layers]
    b_refs = refs[num_layers:2 * num_layers]
    o_ref = refs[2 * num_layers]

    h = x_ref[...].astype(w_refs[0].dtype)          # activations fed to the MXU
    for i in range(num_layers):
        # bf16 x bf16 -> f32 accumulation on the MXU.
        y = jnp.dot(h, w_refs[i][...], preferred_element_type=jnp.float32)
        y = y + b_refs[i][...]                      # f32 bias epilogue (VPU)
        if i < num_layers - 1:
            # single VPU pass: ReLU fused with the downcast for the next matmul
            h = jnp.maximum(y, 0.0).astype(w_refs[i + 1].dtype)
        else:
            o_ref[...] = y.astype(o_ref.dtype)      # lane-dense unmasked store


def init_feedforward_params(key, input_dim, hidden_dim, output_dim, depth=1,
                            dtype=jnp.float32):
    """PyTorch-style params: list of (W (out,in), b (out,)) for every Linear."""
    dims = [(input_dim, hidden_dim)]
    for _ in range(depth):
        dims.append((hidden_dim, hidden_dim))
    dims.append((hidden_dim, output_dim))

    params = []
    for fan_in, fan_out in dims:
        key, kw, kb = jax.random.split(key, 3)
        bound = 1.0 / float(fan_in) ** 0.5
        W = jax.random.uniform(kw, (fan_out, fan_in), dtype=dtype,
                               minval=-bound, maxval=bound)
        b = jax.random.uniform(kb, (fan_out,), dtype=dtype,
                               minval=-bound, maxval=bound)
        params.append((W, b))
    return params


def prepare_feedforward_params(params, matmul_dtype=jnp.bfloat16):
    """One-time prep (outside the forward path): transpose to (in, out),
    zero-pad both dims to multiples of LANE, cast weights to matmul_dtype,
    reshape biases to (1, out_pad) f32.  Returns [(w_pad, b_pad, true_out)]."""
    prepared = []
    for W, b in params:
        out_dim, in_dim = W.shape
        in_pad = _round_up(in_dim, LANE)
        out_pad = _round_up(out_dim, LANE)
        w_t = jnp.transpose(W).astype(matmul_dtype)          # (in, out)
        w_p = jnp.zeros((in_pad, out_pad), matmul_dtype).at[:in_dim, :out_dim].set(w_t)
        b_p = jnp.zeros((1, out_pad), jnp.float32).at[0, :out_dim].set(
            b.astype(jnp.float32))
        prepared.append((w_p, b_p, out_dim))
    return prepared


def feedforward_forward(prepared_params, x):
    """x: (B, input_dim) -> (B, output_dim) via one fused Pallas kernel."""
    out_dtype = x.dtype
    B, in_dim = x.shape
    num_layers = len(prepared_params)
    out_dim = prepared_params[-1][2]

    ws = [p[0] for p in prepared_params]
    bs = [p[1] for p in prepared_params]
    in_pad = ws[0].shape[0]
    out_pad = ws[-1].shape[1]
    assert in_dim <= in_pad and out_dim <= out_pad

    # --- generation-aware VMEM budget ---------------------------------------
    vmem_cap = _tpu_vmem_capacity_bytes()
    vmem_budget = (vmem_cap * 25) // 32          # ~100 MiB @128 MiB, ~50 MiB @64 MiB

    weight_bytes = sum(int(w.size) * w.dtype.itemsize for w in ws)
    bias_bytes = sum(int(b.size) * b.dtype.itemsize for b in bs)
    resident_bytes = weight_bytes + bias_bytes   # single-buffered residents
    # TODO(synk): switch to the streaming path instead of asserting once the
    # resident weights stop fitting in VMEM.
    assert resident_bytes < vmem_budget // 2, (
        "resident-weight design exceeds the VMEM budget; needs weight streaming")

    # --- batch tiling ---------------------------------------------------------
    ncores = _tensorcores_per_chip()
    B_pad = _round_up(B, SUBLANE)
    tile_m = min(TILE_M_MAX, B_pad)

    # On 2-TC chips keep grid_m a multiple of the core count so the "parallel"
    # batch axis feeds both TensorCores.
    if ncores > 1 and B_pad >= ncores * SUBLANE:
        grid_m = _round_up(pl.cdiv(B_pad, tile_m), ncores)
        tile_m = _round_up(pl.cdiv(B_pad, grid_m), SUBLANE)

    max_feat = max([in_pad] + [w.shape[1] for w in ws])

    def _vmem_needed(tm, x_itemsize):
        act = 2 * tm * max_feat * 4                                  # live f32 y + next h
        io = 2 * (tm * in_pad * x_itemsize +
                  tm * out_pad * jnp.dtype(out_dtype).itemsize)      # double-buffered I/O
        return resident_bytes + act + io

    # Shrink tile_m only if the (pessimistic, 2x-margined) estimate doesn't fit.
    while tile_m > SUBLANE and 2 * _vmem_needed(tile_m, 4) > vmem_budget:
        tile_m = max(SUBLANE, _round_up(tile_m // 2, SUBLANE))

    B_pad = _round_up(B_pad, tile_m)
    grid_m = B_pad // tile_m
    assert tile_m % SUBLANE == 0 and B_pad % tile_m == 0

    # --- skip wrapper-side pad / slice HBM round trips when shapes align -----
    need_x_pad = not (B % tile_m == 0 and in_dim == in_pad)
    need_out_slice = not (B_pad == B and out_dim == out_pad)
    if need_x_pad:
        # bf16 slab halves the Pallas-side read; zero rows/cols are inert.
        x_in = jnp.zeros((B_pad, in_pad), jnp.bfloat16).at[:B, :in_dim].set(
            x.astype(jnp.bfloat16))
    else:
        x_in = x                                   # kernel casts in VMEM

    vmem_limit = int(min(
        max(2 * _vmem_needed(tile_m, x_in.dtype.itemsize) + resident_bytes, 8 << 20),
        vmem_budget))

    kernel = functools.partial(_fused_mlp_kernel, num_layers=num_layers)

    def _run(single_buffer_residents):
        resident_kwargs = {}
        if single_buffer_residents:
            # Constant-index blocks: double-buffering them is pure VMEM waste.
            resident_kwargs = dict(pipeline_mode=pl.Buffered(1))
        in_specs = [pl.BlockSpec((tile_m, in_pad), lambda i: (i, 0))]
        in_specs += [pl.BlockSpec(w.shape, lambda i: (0, 0), **resident_kwargs)
                     for w in ws]
        in_specs += [pl.BlockSpec(b.shape, lambda i: (0, 0), **resident_kwargs)
                     for b in bs]
        out_spec = pl.BlockSpec((tile_m, out_pad), lambda i: (i, 0))   # lane-dense
        return pl.pallas_call(
            kernel,
            out_shape=jax.ShapeDtypeStruct((B_pad, out_pad), out_dtype),
            grid_spec=pltpu.PrefetchScalarGridSpec(
                num_scalar_prefetch=0,
                grid=(grid_m,),
                in_specs=in_specs,
                out_specs=out_spec,
            ),
            compiler_params=pltpu.CompilerParams(
                dimension_semantics=("parallel",),
                vmem_limit_bytes=vmem_limit,
            ),
        )(x_in, *ws, *bs)

    try:
        y_p = _run(True)
    except Exception:
        # Running JAX rejected single-buffered residents; fall back to defaults.
        y_p = _run(False)

    if need_out_slice:
        return y_p[:B, :out_dim]
    return y_p


def feedforward_reference(params, x):
    """Pure-JAX f32 reference matching the PyTorch module."""
    n = len(params)
    h = x
    for i, (W, b) in enumerate(params):
        h = h @ W.T + b
        if i < n - 1:
            h = jnp.maximum(h, 0.0)
    return h


if __name__ == "__main__":
    key = jax.random.PRNGKey(0)

    configs = [
        # (batch, input_dim, hidden_dim, output_dim, depth, tol)
        (8,   16,  32,  8,   1, 2e-2),   # tiny, unaligned -> padded path
        (256, 128, 256, 128, 1, 3e-2),   # aligned -> no-pad fast path
    ]
    for batch, input_dim, hidden_dim, output_dim, depth, tol in configs:
        key, k_param, k_x = jax.random.split(key, 3)
        params = init_feedforward_params(k_param, input_dim, hidden_dim,
                                         output_dim, depth=depth,
                                         dtype=jnp.float32)
        prepared = prepare_feedforward_params(params)      # one-time prep
        x = jax.random.normal(k_x, (batch, input_dim), dtype=jnp.float32)

        out = jax.block_until_ready(feedforward_forward(prepared, x))
        ref = feedforward_reference(params, x)

        assert out.shape == (batch, output_dim)
        max_diff = float(jnp.max(jnp.abs(out - ref)))
        assert jnp.allclose(out, ref, atol=tol, rtol=tol), (
            f"mismatch vs reference for cfg "
            f"{(batch, input_dim, hidden_dim, output_dim, depth)}, "
            f"max abs diff {max_diff}")

    print("KERNEL_OK")
</pallas_src>

<mosaic_0001>
module attributes {stable_mosaic.version = 11 : i64} {
  func.func @_fused_mlp_kernel(%arg0: i32, %arg1: memref<16x128xbf16, #tpu.memory_space<vmem>>, %arg2: memref<128x128xbf16, #tpu.memory_space<vmem>>, %arg3: memref<128x128xbf16, #tpu.memory_space<vmem>>, %arg4: memref<128x128xbf16, #tpu.memory_space<vmem>>, %arg5: memref<1x128xf32, #tpu.memory_space<vmem>>, %arg6: memref<1x128xf32, #tpu.memory_space<vmem>>, %arg7: memref<1x128xf32, #tpu.memory_space<vmem>>, %arg8: memref<16x128xf32, #tpu.memory_space<vmem>>) attributes {dimension_semantics = [#tpu.dimension_semantics<parallel>], iteration_bounds = array<i64: 1>, scalar_prefetch = 0 : i64, scratch_operands = 0 : i64, tpu.core_type = #tpu.core_type<tc>, window_params = [{transform_indices = @transform_0, window_bounds = array<i64: 16, 128>}, {pipeline_mode = #tpu.pipeline_mode<synchronous>, transform_indices = @transform_1, window_bounds = array<i64: 128, 128>}, {pipeline_mode = #tpu.pipeline_mode<synchronous>, transform_indices = @transform_2, window_bounds = array<i64: 128, 128>}, {pipeline_mode = #tpu.pipeline_mode<synchronous>, transform_indices = @transform_3, window_bounds = array<i64: 128, 128>}, {pipeline_mode = #tpu.pipeline_mode<synchronous>, transform_indices = @transform_4, window_bounds = array<i64: 1, 128>}, {pipeline_mode = #tpu.pipeline_mode<synchronous>, transform_indices = @transform_5, window_bounds = array<i64: 1, 128>}, {pipeline_mode = #tpu.pipeline_mode<synchronous>, transform_indices = @transform_6, window_bounds = array<i64: 1, 128>}, {transform_indices = @transform_7, window_bounds = array<i64: 16, 128>}]} {
    %c0 = arith.constant 0 : index
    %c0_0 = arith.constant 0 : index
    %0 = vector.load %arg1[%c0, %c0_0] : memref<16x128xbf16, #tpu.memory_space<vmem>>, vector<16x128xbf16>
    %c0_1 = arith.constant 0 : index
    %c0_2 = arith.constant 0 : index
    %1 = vector.load %arg2[%c0_1, %c0_2] : memref<128x128xbf16, #tpu.memory_space<vmem>>, vector<128x128xbf16>
    %cst = arith.constant dense<0.000000e+00> : vector<16x128xf32>
    %2 = tpu.matmul %0, %1, %cst {dimension_numbers = #tpu.dot_dimension_numbers<[1], [0], [0], [1], [0, 0, 1, 1], [], []>} : vector<16x128xbf16>, vector<128x128xbf16>, vector<16x128xf32> -> vector<16x128xf32>
    %c0_3 = arith.constant 0 : index
    %c0_4 = arith.constant 0 : index
    %3 = vector.load %arg5[%c0_3, %c0_4] : memref<1x128xf32, #tpu.memory_space<vmem>>, vector<1x128xf32>
    %4 = vector.broadcast %3 : vector<1x128xf32> to vector<16x128xf32>
    %5 = arith.addf %2, %4 : vector<16x128xf32>
    %cst_5 = arith.constant 0.000000e+00 : f32
    %6 = vector.broadcast %cst_5 : f32 to vector<16x128xf32>
    %7 = arith.maximumf %5, %6 : vector<16x128xf32>
    %8 = arith.truncf %7 : vector<16x128xf32> to vector<16x128xbf16>
    %c0_6 = arith.constant 0 : index
    %c0_7 = arith.constant 0 : index
    %9 = vector.load %arg3[%c0_6, %c0_7] : memref<128x128xbf16, #tpu.memory_space<vmem>>, vector<128x128xbf16>
    %cst_8 = arith.constant dense<0.000000e+00> : vector<16x128xf32>
    %10 = tpu.matmul %8, %9, %cst_8 {dimension_numbers = #tpu.dot_dimension_numbers<[1], [0], [0], [1], [0, 0, 1, 1], [], []>} : vector<16x128xbf16>, vector<128x128xbf16>, vector<16x128xf32> -> vector<16x128xf32>
    %c0_9 = arith.constant 0 : index
    %c0_10 = arith.constant 0 : index
    %11 = vector.load %arg6[%c0_9, %c0_10] : memref<1x128xf32, #tpu.memory_space<vmem>>, vector<1x128xf32>
    %12 = vector.broadcast %11 : vector<1x128xf32> to vector<16x128xf32>
    %13 = arith.addf %10, %12 : vector<16x128xf32>
    %cst_11 = arith.constant 0.000000e+00 : f32
    %14 = vector.broadcast %cst_11 : f32 to vector<16x128xf32>
    %15 = arith.maximumf %13, %14 : vector<16x128xf32>
    %16 = arith.truncf %15 : vector<16x128xf32> to vector<16x128xbf16>
    %c0_12 = arith.constant 0 : index
    %c0_13 = arith.constant 0 : index
    %17 = vector.load %arg4[%c0_12, %c0_13] : memref<128x128xbf16, #tpu.memory_space<vmem>>, vector<128x128xbf16>
    %cst_14 = arith.constant dense<0.000000e+00> : vector<16x128xf32>
    %18 = tpu.matmul %16, %17, %cst_14 {dimension_numbers = #tpu.dot_dimension_numbers<[1], [0], [0], [1], [0, 0, 1, 1], [], []>} : vector<16x128xbf16>, vector<128x128xbf16>, vector<16x128xf32> -> vector<16x128xf32>
    %c0_15 = arith.constant 0 : index
    %c0_16 = arith.constant 0 : index
    %19 = vector.load %arg7[%c0_15, %c0_16] : memref<1x128xf32, #tpu.memory_space<vmem>>, vector<1x128xf32>
    %20 = vector.broadcast %19 : vector<1x128xf32> to vector<16x128xf32>
    %21 = arith.addf %18, %20 : vector<16x128xf32>
    %c0_17 = arith.constant 0 : index
    %c0_18 = arith.constant 0 : index
    %22 = vector.load %arg8[%c0_17, %c0_18] : memref<16x128xf32, #tpu.memory_space<vmem>>, vector<16x128xf32>
    tpu.vector_store %arg8[%c0_17, %c0_18], %21 {strides = array<i32>} : memref<16x128xf32, #tpu.memory_space<vmem>>, vector<16x128xf32>,
    return
  }
  func.func @transform_0(%arg0: i32) -> (i32, i32) {
    %c0_i32 = arith.constant 0 : i32
    %c0_i32_0 = arith.constant 0 : i32
    return %arg0, %c0_i32 : i32, i32
  }
  func.func @transform_1(%arg0: i32) -> (i32, i32) {
    %c0_i32 = arith.constant 0 : i32
    %c0_i32_0 = arith.constant 0 : i32
    %c0_i32_1 = arith.constant 0 : i32
    return %c0_i32, %c0_i32_0 : i32, i32
  }
  func.func @transform_2(%arg0: i32) -> (i32, i32) {
    %c0_i32 = arith.constant 0 : i32
    %c0_i32_0 = arith.constant 0 : i32
    %c0_i32_1 = arith.constant 0 : i32
    return %c0_i32, %c0_i32_0 : i32, i32
  }
  func.func @transform_3(%arg0: i32) -> (i32, i32) {
    %c0_i32 = arith.constant 0 : i32
    %c0_i32_0 = arith.constant 0 : i32
    %c0_i32_1 = arith.constant 0 : i32
    return %c0_i32, %c0_i32_0 : i32, i32
  }
  func.func @transform_4(%arg0: i32) -> (i32, i32) {
    %c0_i32 = arith.constant 0 : i32
    %c0_i32_0 = arith.constant 0 : i32
    %c0_i32_1 = arith.constant 0 : i32
    return %c0_i32, %c0_i32_0 : i32, i32
  }
  func.func @transform_5(%arg0: i32) -> (i32, i32) {
    %c0_i32 = arith.constant 0 : i32
    %c0_i32_0 = arith.constant 0 : i32
    %c0_i32_1 = arith.constant 0 : i32
    return %c0_i32, %c0_i32_0 : i32, i32
  }
  func.func @transform_6(%arg0: i32) -> (i32, i32) {
    %c0_i32 = arith.constant 0 : i32
    %c0_i32_0 = arith.constant 0 : i32
    %c0_i32_1 = arith.constant 0 : i32
    return %c0_i32, %c0_i32_0 : i32, i32
  }
  func.func @transform_7(%arg0: i32) -> (i32, i32) {
    %c0_i32 = arith.constant 0 : i32
    %c0_i32_0 = arith.constant 0 : i32
    return %arg0, %c0_i32 : i32, i32
  }
}

module attributes {stable_mosaic.version = 11 : i64} {
  func.func @_fused_mlp_kernel(%arg0: i32, %arg1: memref<16x128xbf16, #tpu.memory_space<vmem>>, %arg2: memref<128x128xbf16, #tpu.memory_space<vmem>>, %arg3: memref<128x128xbf16, #tpu.memory_space<vmem>>, %arg4: memref<128x128xbf16, #tpu.memory_space<vmem>>, %arg5: memref<1x128xf32, #tpu.memory_space<vmem>>, %arg6: memref<1x128xf32, #tpu.memory_space<vmem>>, %arg7: memref<1x128xf32, #tpu.memory_space<vmem>>, %arg8: memref<16x128xf32, #tpu.memory_space<vmem>>) attributes {dimension_semantics = [#tpu.dimension_semantics<parallel>], iteration_bounds = array<i64: 1>, scalar_prefetch = 0 : i64, scratch_operands = 0 : i64, tpu.core_type = #tpu.core_type<tc>, window_params = [{transform_indices = @transform_0, window_bounds = array<i64: 16, 128>}, {pipeline_mode = #tpu.pipeline_mode<synchronous>, transform_indices = @transform_1, window_bounds = array<i64: 128, 128>}, {pipeline_mode = #tpu.pipeline_mode<synchronous>, transform_indices = @transform_2, window_bounds = array<i64: 128, 128>}, {pipeline_mode = #tpu.pipeline_mode<synchronous>, transform_indices = @transform_3, window_bounds = array<i64: 128, 128>}, {pipeline_mode = #tpu.pipeline_mode<synchronous>, transform_indices = @transform_4, window_bounds = array<i64: 1, 128>}, {pipeline_mode = #tpu.pipeline_mode<synchronous>, transform_indices = @transform_5, window_bounds = array<i64: 1, 128>}, {pipeline_mode = #tpu.pipeline_mode<synchronous>, transform_indices = @transform_6, window_bounds = array<i64: 1, 128>}, {transform_indices = @transform_7, window_bounds = array<i64: 16, 128>}]} {
    %c0 = arith.constant 0 : index
    %c0_0 = arith.constant 0 : index
    %0 = vector.load %arg1[%c0, %c0_0] : memref<16x128xbf16, #tpu.memory_space<vmem>>, vector<16x128xbf16>
    %c0_1 = arith.constant 0 : index
    %c0_2 = arith.constant 0 : index
    %1 = vector.load %arg2[%c0_1, %c0_2] : memref<128x128xbf16, #tpu.memory_space<vmem>>, vector<128x128xbf16>
    %cst = arith.constant dense<0.000000e+00> : vector<16x128xf32>
    %2 = tpu.matmul %0, %1, %cst {dimension_numbers = #tpu.dot_dimension_numbers<[1], [0], [0], [1], [0, 0, 1, 1], [], []>} : vector<16x128xbf16>, vector<128x128xbf16>, vector<16x128xf32> -> vector<16x128xf32>
    %c0_3 = arith.constant 0 : index
    %c0_4 = arith.constant 0 : index
    %3 = vector.load %arg5[%c0_3, %c0_4] : memref<1x128xf32, #tpu.memory_space<vmem>>, vector<1x128xf32>
    %4 = vector.broadcast %3 : vector<1x128xf32> to vector<16x128xf32>
    %5 = arith.addf %2, %4 : vector<16x128xf32>
    %cst_5 = arith.constant 0.000000e+00 : f32
    %6 = vector.broadcast %cst_5 : f32 to vector<16x128xf32>
    %7 = arith.maximumf %5, %6 : vector<16x128xf32>
    %8 = arith.truncf %7 : vector<16x128xf32> to vector<16x128xbf16>
    %c0_6 = arith.constant 0 : index
    %c0_7 = arith.constant 0 : index
    %9 = vector.load %arg3[%c0_6, %c0_7] : memref<128x128xbf16, #tpu.memory_space<vmem>>, vector<128x128xbf16>
    %cst_8 = arith.constant dense<0.000000e+00> : vector<16x128xf32>
    %10 = tpu.matmul %8, %9, %cst_8 {dimension_numbers = #tpu.dot_dimension_numbers<[1], [0], [0], [1], [0, 0, 1, 1], [], []>} : vector<16x128xbf16>, vector<128x128xbf16>, vector<16x128xf32> -> vector<16x128xf32>
    %c0_9 = arith.constant 0 : index
    %c0_10 = arith.constant 0 : index
    %11 = vector.load %arg6[%c0_9, %c0_10] : memref<1x128xf32, #tpu.memory_space<vmem>>, vector<1x128xf32>
    %12 = vector.broadcast %11 : vector<1x128xf32> to vector<16x128xf32>
    %13 = arith.addf %10, %12 : vector<16x128xf32>
    %cst_11 = arith.constant 0.000000e+00 : f32
    %14 = vector.broadcast %cst_11 : f32 to vector<16x128xf32>
    %15 = arith.maximumf %13, %14 : vector<16x128xf32>
    %16 = arith.truncf %15 : vector<16x128xf32> to vector<16x128xbf16>
    %c0_12 = arith.constant 0 : index
    %c0_13 = arith.constant 0 : index
    %17 = vector.load %arg4[%c0_12, %c0_13] : memref<128x128xbf16, #tpu.memory_space<vmem>>, vector<128x128xbf16>
    %cst_14 = arith.constant dense<0.000000e+00> : vector<16x128xf32>
    %18 = tpu.matmul %16, %17, %cst_14 {dimension_numbers = #tpu.dot_dimension_numbers<[1], [0], [0], [1], [0, 0, 1, 1], [], []>} : vector<16x128xbf16>, vector<128x128xbf16>, vector<16x128xf32> -> vector<16x128xf32>
    %c0_15 = arith.constant 0 : index
    %c0_16 = arith.constant 0 : index
    %19 = vector.load %arg7[%c0_15, %c0_16] : memref<1x128xf32, #tpu.memory_space<vmem>>, vector<1x128xf32>
    %20 = vector.broadcast %19 : vector<1x128xf32> to vector<16x128xf32>
    %21 = arith.addf %18, %20 : vector<16x128xf32>
    %c0_17 = arith.constant 0 : index
    %c0_18 = arith.constant 0 : index
    %22 = vector.load %arg8[%c0_17, %c0_18] : memref<16x128xf32, #tpu.memory_space<vmem>>, vector<16x128xf32>
    tpu.vector_store %arg8[%c0_17, %c0_18], %21 {strides = array<i32>} : memref<16x128xf32, #tpu.memory_space<vmem>>, vector<16x128xf32>,
    return
  }
  func.func @transform_0(%arg0: i32) -> (i32, i32) {
    %c0_i32 = arith.constant 0 : i32
    %c0_i32_0 = arith.constant 0 : i32
    return %arg0, %c0_i32 : i32, i32
  }
  func.func @transform_1(%arg0: i32) -> (i32, i32) {
    %c0_i32 = arith.constant 0 : i32
    %c0_i32_0 = arith.constant 0 : i32
    %c0_i32_1 = arith.constant 0 : i32
    return %c0_i32, %c0_i32_0 : i32, i32
  }
  func.func @transform_2(%arg0: i32) -> (i32, i32) {
    %c0_i32 = arith.constant 0 : i32
    %c0_i32_0 = arith.constant 0 : i32
    %c0_i32_1 = arith.constant 0 : i32
    return %c0_i32, %c0_i32_0 : i32, i32
  }
  func.func @transform_3(%arg0: i32) -> (i32, i32) {
    %c0_i32 = arith.constant 0 : i32
    %c0_i32_0 = arith.constant 0 : i32
    %c0_i32_1 = arith.constant 0 : i32
    return %c0_i32, %c0_i32_0 : i32, i32
  }
  func.func @transform_4(%arg0: i32) -> (i32, i32) {
    %c0_i32 = arith.constant 0 : i32
    %c0_i32_0 = arith.constant 0 : i32
    %c0_i32_1 = arith.constant 0 : i32
    return %c0_i32, %c0_i32_0 : i32, i32
  }
  func.func @transform_5(%arg0: i32) -> (i32, i32) {
    %c0_i32 = arith.constant 0 : i32
    %c0_i32_0 = arith.constant 0 : i32
    %c0_i32_1 = arith.constant 0 : i32
    return %c0_i32, %c0_i32_0 : i32, i32
  }
  func.func @transform_6(%arg0: i32) -> (i32, i32) {
    %c0_i32 = arith.constant 0 : i32
    %c0_i32_0 = arith.constant 0 : i32
    %c0_i32_1 = arith.constant 0 : i32
    return %c0_i32, %c0_i32_0 : i32, i32
  }
  func.func @transform_7(%arg0: i32) -> (i32, i32) {
    %c0_i32 = arith.constant 0 : i32
    %c0_i32_0 = arith.constant 0 : i32
    return %arg0, %c0_i32 : i32, i32
  }
}

</mosaic_0001>

<bundles_post_ra>
// kernel: tpu_custom_call.1
= control target key start
LH: loop header
LB: loop body
LE: loop exit
PB: predicated region body
PF: predicated region fallthrough
CT: control target
= control target key end

     0   :  { %12 = vsyncpa [#allocation3], 0  ;;  %s830_s0 = inlined_call_operand.hbm [shape: bf16[16,128], index: 0, kind: input, shape index: {}]   ;;  %s831_s1 = inlined_call_operand.hbm [shape: bf16[128,128], index: 1, kind: input, shape index: {}]   ;;  %s832_s2 = inlined_call_operand.hbm [shape: bf16[128,128], index: 2, kind: input, shape index: {}]   ;;  %s833_s3 = inlined_call_operand.hbm [shape: bf16[128,128], index: 3, kind: input, shape index: {}]   ;;  %s834_s4 = inlined_call_operand.vmem [shape: f32[1,128], index: 4, kind: input, shape index: {}]   ;;  %s835_s5 = inlined_call_operand.vmem [shape: f32[1,128], index: 5, kind: input, shape index: {}]   ;;  %s836_s6 = inlined_call_operand.vmem [shape: f32[1,128], index: 6, kind: input, shape index: {}]   ;;  %s837_s7 = inlined_call_operand.hbm [shape: f32[16,128], index: 7, kind: output, shape index: {}]  }
   0x1   :  { %13 = vsyncpa [#allocation6], 0 }
   0x2   :  { %14 = vsyncpa [#allocation9], 0 }
   0x3   :  { %15 = vsyncpa [#allocation4], 0  ;;  %s713_s24 = smov [#allocation5]   ;;  %s714_s26 = smov [#allocation2]  }
   0x4   :  { %s33_s25 = sshll.u32 %s713_s24, 4  ;;  %s21_s27 = sshll.u32 %s714_s26, 4  ;;  %s34_s25 = int_to_ptr.vmem [resolvable:$true] %s33_s25  ;;  %s22_s27 = int_to_ptr.vmem [resolvable:$true] %s21_s27 }
   0x5   :  { %s613_s28 = scalar_lea.vmem %s34_s25, 1024  ;;  %p618_p1 = scmp.lt.s32.totalorder %s34_s25, %s34_s25 }
   0x6   :  { %p614_p0 = scmp.ne.s32.totalorder %s34_s25, %s613_s28  ;;  %p619_p2 = scmp.lt.s32.totalorder %s613_s28, %s613_s28 }
   0x8   :  { %p620_p3 = por %p619_p2, %p618_p1 }
   0xa   :  { %p621_p4 = pnand %p620_p3, %p614_p0 }
   0xc   :  { %624 = shalt.err (!%p621_p4)
}
   0xd   :  { %s715_s29 = smov 64   ;;  %s716_s30 = smov 4  }
   0xe   :  { %39 = dma.hbm_to_vmem [thread:$0]  %s831_s1, 1024, %s34_s25, [#allocation6], %s715_s29, %s715_s29, %s716_s30  }
   0xf   :  { %s633_s10 = scalar_lea.vmem %s22_s27, 128  ;;  %p638_p6 = scmp.lt.s32.totalorder %s22_s27, %s22_s27 }
  0x10   :  { %p634_p5 = scmp.ne.s32.totalorder %s22_s27, %s633_s10  ;;  %p639_p7 = scmp.lt.s32.totalorder %s633_s10, %s633_s10 }
  0x12   :  { %p640_p8 = por %p639_p7, %p638_p6 }
  0x14   :  { %p641_p9 = pnand %p640_p8, %p634_p5 }
  0x16   :  { %644 = shalt.err (!%p641_p9)
}
  0x17   :  { %27 = dma.hbm_to_vmem [thread:$0]  %s830_s0, 128, %s22_s27, [#allocation3], %s715_s29, %s715_s29, %s716_s30  }
  0x18   :  { %s717_s13 = smov [#allocation7]   ;;  %s718_s15 = smov [#allocation8]  }
  0x19   :  { %s45_s14 = sshll.u32 %s717_s13, 4  ;;  %s57_s16 = sshll.u32 %s718_s15, 4  ;;  %s46_s14 = int_to_ptr.vmem [resolvable:$true] %s45_s14  ;;  %s58_s16 = int_to_ptr.vmem [resolvable:$true] %s57_s16 }
  0x1a   :  { %s653_s1 = scalar_lea.vmem %s46_s14, 1024  ;;  %p658_p11 = scmp.lt.s32.totalorder %s46_s14, %s46_s14 }
  0x1b   :  { %p654_p10 = scmp.ne.s32.totalorder %s46_s14, %s653_s1  ;;  %p659_p12 = scmp.lt.s32.totalorder %s653_s1, %s653_s1 }
  0x1d   :  { %p660_p13 = por %p659_p12, %p658_p11 }
  0x1f   :  { %p661_p0 = pnand %p660_p13, %p654_p10 }
  0x21   :  { %664 = shalt.err (!%p661_p0)
}
  0x22   :  { %51 = dma.hbm_to_vmem [thread:$0]  %s832_s2, 1024, %s46_s14, [#allocation6], %s715_s29, %s715_s29, %s716_s30  }
  0x23   :  { %s673_s0 = scalar_lea.vmem %s58_s16, 1024  ;;  %p678_p2 = scmp.lt.s32.totalorder %s58_s16, %s58_s16 }
  0x24   :  { %p674_p1 = scmp.ne.s32.totalorder %s58_s16, %s673_s0  ;;  %p679_p3 = scmp.lt.s32.totalorder %s673_s0, %s673_s0 }
  0x26   :  { %p680_p4 = por %p679_p3, %p678_p2 }
  0x28   :  { %p681_p5 = pnand %p680_p4, %p674_p1 }
  0x2a   :  { %684 = shalt.err (!%p681_p5)
}
  0x2b   :  { %63 = dma.hbm_to_vmem [thread:$0]  %s833_s3, 1024, %s58_s16, [#allocation9], %s715_s29, %s715_s29, %s716_s30  }
  0x2c   :  { %705 = dma.done.wait [#allocation3], 128  }
  0x2d   :  { %706 = vsyncadd [#allocation3], 4294967168 }
  0x2e   :  { %707 = dma.done.wait [#allocation6], 2048  }
  0x2f   :  { %708 = vsyncadd [#allocation6], 4294965248 }
  0x30   :  { %709 = dma.done.wait [#allocation9], 1024  }
  0x31   :  { %710 = vsyncadd [#allocation9], 4294966272  ;;  %v719_v0 = vmov 0.0   ;;  %vm720_vm0 = vmmov 0   ;;  %v580_v1 = vld [vmem:[#allocation5 + $0x38] sm:$0xff]   ;;  %v581_v2 = vld [vmem:[#allocation5 + $0x30] sm:$0xff]  }
  0x32   :  { %509 = vmatprep.subr.bf16.mxu0 %v719_v0  ;;  %525 = vmatprep.mubr.msk.bf16.mxu0 %vm720_vm0, %v719_v0  ;;  %v582_v3 = vld [vmem:[#allocation5 + $0x28] sm:$0xff]   ;;  %v589_v4 = vld [vmem:[#allocation7 + $0x38] sm:$0xff]   ;;  %v583_v5 = vld [vmem:[#allocation5 + $0x20] sm:$0xff]   ;;  %s721_s24 = smov [#allocation10]  }
  0x33   :  { %529 = vmatprep.subr.bf16.mxu1 %v719_v0  ;;  %545 = vmatprep.mubr.msk.bf16.mxu1 %vm720_vm0, %v719_v0  ;;  %v590_v6 = vld [vmem:[#allocation7 + $0x30] sm:$0xff]   ;;  %v584_v7 = vld [vmem:[#allocation5 + $0x18] sm:$0xff]   ;;  %v591_v8 = vld [vmem:[#allocation7 + $0x28] sm:$0xff]   ;;  %s440_s25 = sshll.u32 %s721_s24, 4  ;;  %s441_s25 = int_to_ptr.vmem [resolvable:$true] %s440_s25 }
  0x34   :  { %510 = vmatpush3.bf16.msra.mxu0 %v580_v1  ;;  %530 = vmatpush3.bf16.msra.mxu1 %v589_v4  ;;  %v585_v9 = vld [vmem:[#allocation5 + $0x10] sm:$0xff]   ;;  %v592_v10 = vld [vmem:[#allocation7 + $0x20] sm:$0xff]   ;;  %v586_v11 = vld [vmem:[#allocation5 + $0x8] sm:$0xff]   ;;  %p690_p7 = scmp.lt.s32.totalorder %s441_s25, %s441_s25 }
  0x35   :  { %511 = vmatprep.subr.bf16.mxu0 %v719_v0  ;;  %531 = vmatprep.subr.bf16.mxu1 %v719_v0  ;;  %v593_v12 = vld [vmem:[#allocation7 + $0x18] sm:$0xff]   ;;  %v587_v13 = vld [vmem:[#allocation5] sm:$0xff]   ;;  %v594_v15 = vld [vmem:[#allocation7 + $0x10] sm:$0xff]  }
  0x36   :  { %v588_v14 = vld [vmem:[#allocation2] sm:$0xff]   ;;  %v595_v16 = vld [vmem:[#allocation7 + $0x8] sm:$0xff]   ;;  %v596_v17 = vld [vmem:[#allocation7] sm:$0xff]  }
  0x37   :  { %v597_v18 = vld [vmem:[#allocation8 + $0x38] sm:$0xff]   ;;  %v598_v19 = vld [vmem:[#allocation8 + $0x30] sm:$0xff]   ;;  %v599_v20 = vld [vmem:[#allocation8 + $0x28] sm:$0xff]  }
  0x38   :  { %512 = vmatpush3.bf16.msra.mxu0 %v581_v2  ;;  %532 = vmatpush3.bf16.msra.mxu1 %v590_v6  ;;  %v600_v21 = vld [vmem:[#allocation8 + $0x20] sm:$0xff]   ;;  %v601_v22 = vld [vmem:[#allocation8 + $0x18] sm:$0xff]   ;;  %v602_v33 = vld [vmem:[#allocation8 + $0x10] sm:$0xff]  }
  0x39   :  { %513 = vmatprep.subr.bf16.mxu0 %v719_v0  ;;  %533 = vmatprep.subr.bf16.mxu1 %v719_v0  ;;  %v454_v23 = vld [vmem:[%s834_s4] ss:$0 sm:$0xff]  ;;  %v603_v34 = vld [vmem:[#allocation8 + $0x8] sm:$0xff]   ;;  %v604_v35 = vld [vmem:[#allocation8] sm:$0xff]  }
  0x3a   :  { %v464_v36 = vld [vmem:[%s835_s5] ss:$0 sm:$0xff]  ;;  %s685_s5 = scalar_lea.vmem %s441_s25, 256 }
  0x3b   :  { %v473_v46 = vld [vmem:[%s836_s6] ss:$0 sm:$0xff]  ;;  %p686_p6 = scmp.ne.s32.totalorder %s441_s25, %s685_s5  ;;  %p691_p8 = scmp.lt.s32.totalorder %s685_s5, %s685_s5 }
  0x3c   :  { %514 = vmatpush3.bf16.msra.mxu0 %v582_v3  ;;  %534 = vmatpush3.bf16.msra.mxu1 %v591_v8 }
  0x3d   :  { %515 = vmatprep.subr.bf16.mxu0 %v719_v0  ;;  %535 = vmatprep.subr.bf16.mxu1 %v719_v0  ;;  %p692_p9 = por %p691_p8, %p690_p7 }
  0x3f   :  { %p693_p10 = pnand %p692_p9, %p686_p6 }
  0x40   :  { %516 = vmatpush3.bf16.msra.mxu0 %v583_v5  ;;  %536 = vmatpush3.bf16.msra.mxu1 %v592_v10 }
  0x41   :  { %517 = vmatprep.subr.bf16.mxu0 %v719_v0  ;;  %537 = vmatprep.subr.bf16.mxu1 %v719_v0 }
  0x44   :  { %518 = vmatpush3.bf16.msra.mxu0 %v584_v7  ;;  %538 = vmatpush3.bf16.msra.mxu1 %v593_v12 }
  0x45   :  { %519 = vmatprep.subr.bf16.mxu0 %v719_v0  ;;  %539 = vmatprep.subr.bf16.mxu1 %v719_v0 }
  0x48   :  { %520 = vmatpush3.bf16.msra.mxu0 %v585_v9  ;;  %540 = vmatpush3.bf16.msra.mxu1 %v594_v15 }
  0x49   :  { %521 = vmatprep.subr.bf16.mxu0 %v719_v0  ;;  %541 = vmatprep.subr.bf16.mxu1 %v719_v0 }
  0x4c   :  { %522 = vmatpush3.bf16.msra.mxu0 %v586_v11  ;;  %542 = vmatpush3.bf16.msra.mxu1 %v595_v16 }
  0x4d   :  { %523 = vmatprep.subr.bf16.mxu0 %v719_v0  ;;  %543 = vmatprep.subr.bf16.mxu1 %v719_v0 }
  0x50   :  { %524 = vmatpush3.bf16.msra.mxu0 %v587_v13  ;;  %544 = vmatpush3.bf16.msra.mxu1 %v596_v17 }
  0x51   :  { %549 = vmatprep.subr.bf16.mxu0 %v719_v0 }
  0x53   :  { %526 = vmatmul.mubr.bf16.vlgmr.msra.gmra.mxu0 %v588_v14 }
  0x54   :  { %565 = vmatprep.mubr.msk.bf16.mxu0 %vm720_vm0, %v719_v0  ;;  %550 = vmatpush3.bf16.msra.mxu0 %v597_v18 }
  0x55   :  { %551 = vmatprep.subr.bf16.mxu0 %v719_v0 }
  0x58   :  { %552 = vmatpush3.bf16.msra.mxu0 %v598_v19 }
  0x59   :  { %553 = vmatprep.subr.bf16.mxu0 %v719_v0 }
  0x5c   :  { %554 = vmatpush3.bf16.msra.mxu0 %v599_v20 }
  0x5d   :  { %555 = vmatprep.subr.bf16.mxu0 %v719_v0 }
  0x60   :  { %556 = vmatpush3.bf16.msra.mxu0 %v600_v21 }
  0x61   :  { %557 = vmatprep.subr.bf16.mxu0 %v719_v0 }
  0x64   :  { %558 = vmatpush3.bf16.msra.mxu0 %v601_v22 }
  0x65   :  { %559 = vmatprep.subr.bf16.mxu0 %v719_v0 }
  0x68   :  { %560 = vmatpush3.bf16.msra.mxu0 %v602_v33 }
  0x69   :  { %561 = vmatprep.subr.bf16.mxu0 %v719_v0 }
  0x6c   :  { %562 = vmatpush3.bf16.msra.mxu0 %v603_v34 }
  0x6d   :  { %563 = vmatprep.subr.bf16.mxu0 %v719_v0 }
  0x70   :  { %564 = vmatpush3.bf16.msra.mxu0 %v604_v35 }
 0x113   :  { %v196_v24 = vpop.f32.mrf.mxu0 }
 0x114   :  { %v197_v26 = vadd.f32 %v454_v23, %v196_v24 }
 0x115   :  { %v527_v25 = vpop.f32.mrf.mxu0 }
 0x116   :  { %v203_v30 = vmax.f32 %v197_v26, 0.0 }
 0x117   :  { %v199_v27 = vpop.f32.mrf.mxu0 }
 0x118   :  { %v200_v28 = vadd.f32 %v454_v23, %v199_v27 }
 0x119   :  { %v528_v29 = vpop.f32.mrf.mxu0 }
 0x11a   :  { %v204_v31 = vmax.f32 %v200_v28, 0.0 }
 0x11c   :  { %v205_v32 = vpack.c.bf16 %v204_v31, %v203_v30 }
 0x11e   :  { %546 = vmatmul.mubr.bf16.vlgmr.msra.gmra.mxu1 %v205_v32 }
 0x1de   :  { %v311_v37 = vpop.f32.mrf.mxu1 }
 0x1df   :  { %v312_v39 = vadd.f32 %v464_v36, %v311_v37 }
 0x1e0   :  { %v547_v38 = vpop.f32.mrf.mxu1 }
 0x1e1   :  { %v318_v43 = vmax.f32 %v312_v39, 0.0 }
 0x1e2   :  { %v314_v40 = vpop.f32.mrf.mxu1 }
 0x1e3   :  { %v315_v41 = vadd.f32 %v464_v36, %v314_v40 }
 0x1e4   :  { %v548_v42 = vpop.f32.mrf.mxu1 }
 0x1e5   :  { %v319_v44 = vmax.f32 %v315_v41, 0.0 }
 0x1e7   :  { %v320_v45 = vpack.c.bf16 %v319_v44, %v318_v43 }
 0x1e9   :  { %566 = vmatmul.mubr.bf16.vlgmr.msra.gmra.mxu0 %v320_v45 }
 0x2a9   :  { %v426_v47 = vpop.f32.mrf.mxu0 }
 0x2aa   :  { %v427_v48 = vadd.f32 %v473_v46, %v426_v47 }
 0x2ab   :  { %v567_v49 = vpop.f32.mrf.mxu0 }
 0x2ac   :  { %433 = vst [vmem:[#allocation10] sm:$0xff] %v427_v48 }
 0x2ad   :  { %v429_v50 = vpop.f32.mrf.mxu0 }
 0x2ae   :  { %v430_v51 = vadd.f32 %v473_v46, %v429_v50 }
 0x2af   :  { %v568_v52 = vpop.f32.mrf.mxu0 }
 0x2b0   :  { %434 = vst [vmem:[#allocation10 + $0x8] sm:$0xff] %v430_v51 }
 0x2b1   :  { %696 = shalt.err (!%p693_p10)
}
 0x2b2   :  { %s722_s26 = smov 128   ;;  %s723_s6 = smov 8  }
 0x2b3   :  { %446 = dma.vmem_to_hbm [thread:$0]  %s441_s25, 256, %s837_s7, [#allocation4], %s722_s26, %s722_s26, %s723_s6  }
 0x2b4   :  { %711 = dma.done.wait [#allocation4], 256  }
 0x2b5   :  { %712 = vsyncadd [#allocation4], 4294967040 }
 0x2b6   :  { %450 = vsyncpa [#allocation3], 1 }
 0x2b7   :  { %451 = vsyncpa [#allocation6], 1 }
 0x2b8   :  { %452 = vsyncpa [#allocation9], 1 }
 0x2b9   :  { %453 = vsyncpa [#allocation4], 1 }

// kernel: tpu_custom_call.1
= control target key start
LH: loop header
LB: loop body
LE: loop exit
PB: predicated region body
PF: predicated region fallthrough
CT: control target
= control target key end

     0   :  { %12 = vsyncpa [#allocation3], 0  ;;  %s830_s0 = inlined_call_operand.hbm [shape: bf16[16,128], index: 0, kind: input, shape index: {}]   ;;  %s831_s1 = inlined_call_operand.hbm [shape: bf16[128,128], index: 1, kind: input, shape index: {}]   ;;  %s832_s2 = inlined_call_operand.hbm [shape: bf16[128,128], index: 2, kind: input, shape index: {}]   ;;  %s833_s3 = inlined_call_operand.hbm [shape: bf16[128,128], index: 3, kind: input, shape index: {}]   ;;  %s834_s4 = inlined_call_operand.vmem [shape: f32[1,128], index: 4, kind: input, shape index: {}]   ;;  %s835_s5 = inlined_call_operand.vmem [shape: f32[1,128], index: 5, kind: input, shape index: {}]   ;;  %s836_s6 = inlined_call_operand.vmem [shape: f32[1,128], index: 6, kind: input, shape index: {}]   ;;  %s837_s7 = inlined_call_operand.hbm [shape: f32[16,128], index: 7, kind: output, shape index: {}]  }
   0x1   :  { %13 = vsyncpa [#allocation6], 0 }
   0x2   :  { %14 = vsyncpa [#allocation9], 0 }
   0x3   :  { %15 = vsyncpa [#allocation4], 0  ;;  %s713_s24 = smov [#allocation5]   ;;  %s714_s26 = smov [#allocation2]  }
   0x4   :  { %s33_s25 = sshll.u32 %s713_s24, 4  ;;  %s21_s27 = sshll.u32 %s714_s26, 4  ;;  %s34_s25 = int_to_ptr.vmem [resolvable:$true] %s33_s25  ;;  %s22_s27 = int_to_ptr.vmem [resolvable:$true] %s21_s27 }
   0x5   :  { %s613_s28 = scalar_lea.vmem %s34_s25, 1024  ;;  %p618_p1 = scmp.lt.s32.totalorder %s34_s25, %s34_s25 }
   0x6   :  { %p614_p0 = scmp.ne.s32.totalorder %s34_s25, %s613_s28  ;;  %p619_p2 = scmp.lt.s32.totalorder %s613_s28, %s613_s28 }
   0x8   :  { %p620_p3 = por %p619_p2, %p618_p1 }
   0xa   :  { %p621_p4 = pnand %p620_p3, %p614_p0 }
   0xc   :  { %624 = shalt.err (!%p621_p4)
}
   0xd   :  { %s715_s29 = smov 64   ;;  %s716_s30 = smov 4  }
   0xe   :  { %39 = dma.hbm_to_vmem [thread:$0]  %s831_s1, 1024, %s34_s25, [#allocation6], %s715_s29, %s715_s29, %s716_s30  }
   0xf   :  { %s633_s10 = scalar_lea.vmem %s22_s27, 128  ;;  %p638_p6 = scmp.lt.s32.totalorder %s22_s27, %s22_s27 }
  0x10   :  { %p634_p5 = scmp.ne.s32.totalorder %s22_s27, %s633_s10  ;;  %p639_p7 = scmp.lt.s32.totalorder %s633_s10, %s633_s10 }
  0x12   :  { %p640_p8 = por %p639_p7, %p638_p6 }
  0x14   :  { %p641_p9 = pnand %p640_p8, %p634_p5 }
  0x16   :  { %644 = shalt.err (!%p641_p9)
}
  0x17   :  { %27 = dma.hbm_to_vmem [thread:$0]  %s830_s0, 128, %s22_s27, [#allocation3], %s715_s29, %s715_s29, %s716_s30  }
  0x18   :  { %s717_s13 = smov [#allocation7]   ;;  %s718_s15 = smov [#allocation8]  }
  0x19   :  { %s45_s14 = sshll.u32 %s717_s13, 4  ;;  %s57_s16 = sshll.u32 %s718_s15, 4  ;;  %s46_s14 = int_to_ptr.vmem [resolvable:$true] %s45_s14  ;;  %s58_s16 = int_to_ptr.vmem [resolvable:$true] %s57_s16 }
  0x1a   :  { %s653_s1 = scalar_lea.vmem %s46_s14, 1024  ;;  %p658_p11 = scmp.lt.s32.totalorder %s46_s14, %s46_s14 }
  0x1b   :  { %p654_p10 = scmp.ne.s32.totalorder %s46_s14, %s653_s1  ;;  %p659_p12 = scmp.lt.s32.totalorder %s653_s1, %s653_s1 }
  0x1d   :  { %p660_p13 = por %p659_p12, %p658_p11 }
  0x1f   :  { %p661_p0 = pnand %p660_p13, %p654_p10 }
  0x21   :  { %664 = shalt.err (!%p661_p0)
}
  0x22   :  { %51 = dma.hbm_to_vmem [thread:$0]  %s832_s2, 1024, %s46_s14, [#allocation6], %s715_s29, %s715_s29, %s716_s30  }
  0x23   :  { %s673_s0 = scalar_lea.vmem %s58_s16, 1024  ;;  %p678_p2 = scmp.lt.s32.totalorder %s58_s16, %s58_s16 }
  0x24   :  { %p674_p1 = scmp.ne.s32.totalorder %s58_s16, %s673_s0  ;;  %p679_p3 = scmp.lt.s32.totalorder %s673_s0, %s673_s0 }
  0x26   :  { %p680_p4 = por %p679_p3, %p678_p2 }
  0x28   :  { %p681_p5 = pnand %p680_p4, %p674_p1 }
  0x2a   :  { %684 = shalt.err (!%p681_p5)
}
  0x2b   :  { %63 = dma.hbm_to_vmem [thread:$0]  %s833_s3, 1024, %s58_s16, [#allocation9], %s715_s29, %s715_s29, %s716_s30  }
  0x2c   :  { %705 = dma.done.wait [#allocation3], 128  }
  0x2d   :  { %706 = vsyncadd [#allocation3], 4294967168 }
  0x2e   :  { %707 = dma.done.wait [#allocation6], 2048  }
  0x2f   :  { %708 = vsyncadd [#allocation6], 4294965248 }
  0x30   :  { %709 = dma.done.wait [#allocation9], 1024  }
  0x31   :  { %710 = vsyncadd [#allocation9], 4294966272  ;;  %v719_v0 = vmov 0.0   ;;  %vm720_vm0 = vmmov 0   ;;  %v580_v1 = vld [vmem:[#allocation5 + $0x38] sm:$0xff]   ;;  %v581_v2 = vld [vmem:[#allocation5 + $0x30] sm:$0xff]  }
  0x32   :  { %509 = vmatprep.subr.bf16.mxu0 %v719_v0  ;;  %525 = vmatprep.mubr.msk.bf16.mxu0 %vm720_vm0, %v719_v0  ;;  %v582_v3 = vld [vmem:[#allocation5 + $0x28] sm:$0xff]   ;;  %v589_v4 = vld [vmem:[#allocation7 + $0x38] sm:$0xff]   ;;  %v583_v5 = vld [vmem:[#allocation5 + $0x20] sm:$0xff]   ;;  %s721_s24 = smov [#allocation10]  }
  0x33   :  { %529 = vmatprep.subr.bf16.mxu1 %v719_v0  ;;  %545 = vmatprep.mubr.msk.bf16.mxu1 %vm720_vm0, %v719_v0  ;;  %v590_v6 = vld [vmem:[#allocation7 + $0x30] sm:$0xff]   ;;  %v584_v7 = vld [vmem:[#allocation5 + $0x18] sm:$0xff]   ;;  %v591_v8 = vld [vmem:[#allocation7 + $0x28] sm:$0xff]   ;;  %s440_s25 = sshll.u32 %s721_s24, 4  ;;  %s441_s25 = int_to_ptr.vmem [resolvable:$true] %s440_s25 }
  0x34   :  { %510 = vmatpush3.bf16.msra.mxu0 %v580_v1  ;;  %530 = vmatpush3.bf16.msra.mxu1 %v589_v4  ;;  %v585_v9 = vld [vmem:[#allocation5 + $0x10] sm:$0xff]   ;;  %v592_v10 = vld [vmem:[#allocation7 + $0x20] sm:$0xff]   ;;  %v586_v11 = vld [vmem:[#allocation5 + $0x8] sm:$0xff]   ;;  %p690_p7 = scmp.lt.s32.totalorder %s441_s25, %s441_s25 }
  0x35   :  { %511 = vmatprep.subr.bf16.mxu0 %v719_v0  ;;  %531 = vmatprep.subr.bf16.mxu1 %v719_v0  ;;  %v593_v12 = vld [vmem:[#allocation7 + $0x18] sm:$0xff]   ;;  %v587_v13 = vld [vmem:[#allocation5] sm:$0xff]   ;;  %v594_v15 = vld [vmem:[#allocation7 + $0x10] sm:$0xff]  }
  0x36   :  { %v588_v14 = vld [vmem:[#allocation2] sm:$0xff]   ;;  %v595_v16 = vld [vmem:[#allocation7 + $0x8] sm:$0xff]   ;;  %v596_v17 = vld [vmem:[#allocation7] sm:$0xff]  }
  0x37   :  { %v597_v18 = vld [vmem:[#allocation8 + $0x38] sm:$0xff]   ;;  %v598_v19 = vld [vmem:[#allocation8 + $0x30] sm:$0xff]   ;;  %v599_v20 = vld [vmem:[#allocation8 + $0x28] sm:$0xff]  }
  0x38   :  { %512 = vmatpush3.bf16.msra.mxu0 %v581_v2  ;;  %532 = vmatpush3.bf16.msra.mxu1 %v590_v6  ;;  %v600_v21 = vld [vmem:[#allocation8 + $0x20] sm:$0xff]   ;;  %v601_v22 = vld [vmem:[#allocation8 + $0x18] sm:$0xff]   ;;  %v602_v33 = vld [vmem:[#allocation8 + $0x10] sm:$0xff]  }
  0x39   :  { %513 = vmatprep.subr.bf16.mxu0 %v719_v0  ;;  %533 = vmatprep.subr.bf16.mxu1 %v719_v0  ;;  %v454_v23 = vld [vmem:[%s834_s4] ss:$0 sm:$0xff]  ;;  %v603_v34 = vld [vmem:[#allocation8 + $0x8] sm:$0xff]   ;;  %v604_v35 = vld [vmem:[#allocation8] sm:$0xff]  }
  0x3a   :  { %v464_v36 = vld [vmem:[%s835_s5] ss:$0 sm:$0xff]  ;;  %s685_s5 = scalar_lea.vmem %s441_s25, 256 }
  0x3b   :  { %v473_v46 = vld [vmem:[%s836_s6] ss:$0 sm:$0xff]  ;;  %p686_p6 = scmp.ne.s32.totalorder %s441_s25, %s685_s5  ;;  %p691_p8 = scmp.lt.s32.totalorder %s685_s5, %s685_s5 }
  0x3c   :  { %514 = vmatpush3.bf16.msra.mxu0 %v582_v3  ;;  %534 = vmatpush3.bf16.msra.mxu1 %v591_v8 }
  0x3d   :  { %515 = vmatprep.subr.bf16.mxu0 %v719_v0  ;;  %535 = vmatprep.subr.bf16.mxu1 %v719_v0  ;;  %p692_p9 = por %p691_p8, %p690_p7 }
  0x3f   :  { %p693_p10 = pnand %p692_p9, %p686_p6 }
  0x40   :  { %516 = vmatpush3.bf16.msra.mxu0 %v583_v5  ;;  %536 = vmatpush3.bf16.msra.mxu1 %v592_v10 }
  0x41   :  { %517 = vmatprep.subr.bf16.mxu0 %v719_v0  ;;  %537 = vmatprep.subr.bf16.mxu1 %v719_v0 }
  0x44   :  { %518 = vmatpush3.bf16.msra.mxu0 %v584_v7  ;;  %538 = vmatpush3.bf16.msra.mxu1 %v593_v12 }
  0x45   :  { %519 = vmatprep.subr.bf16.mxu0 %v719_v0  ;;  %539 = vmatprep.subr.bf16.mxu1 %v719_v0 }
  0x48   :  { %520 = vmatpush3.bf16.msra.mxu0 %v585_v9  ;;  %540 = vmatpush3.bf16.msra.mxu1 %v594_v15 }
  0x49   :  { %521 = vmatprep.subr.bf16.mxu0 %v719_v0  ;;  %541 = vmatprep.subr.bf16.mxu1 %v719_v0 }
  0x4c   :  { %522 = vmatpush3.bf16.msra.mxu0 %v586_v11  ;;  %542 = vmatpush3.bf16.msra.mxu1 %v595_v16 }
  0x4d   :  { %523 = vmatprep.subr.bf16.mxu0 %v719_v0  ;;  %543 = vmatprep.subr.bf16.mxu1 %v719_v0 }
  0x50   :  { %524 = vmatpush3.bf16.msra.mxu0 %v587_v13  ;;  %544 = vmatpush3.bf16.msra.mxu1 %v596_v17 }
  0x51   :  { %549 = vmatprep.subr.bf16.mxu0 %v719_v0 }
  0x53   :  { %526 = vmatmul.mubr.bf16.vlgmr.msra.gmra.mxu0 %v588_v14 }
  0x54   :  { %565 = vmatprep.mubr.msk.bf16.mxu0 %vm720_vm0, %v719_v0  ;;  %550 = vmatpush3.bf16.msra.mxu0 %v597_v18 }
  0x55   :  { %551 = vmatprep.subr.bf16.mxu0 %v719_v0 }
  0x58   :  { %552 = vmatpush3.bf16.msra.mxu0 %v598_v19 }
  0x59   :  { %553 = vmatprep.subr.bf16.mxu0 %v719_v0 }
  0x5c   :  { %554 = vmatpush3.bf16.msra.mxu0 %v599_v20 }
  0x5d   :  { %555 = vmatprep.subr.bf16.mxu0 %v719_v0 }
  0x60   :  { %556 = vmatpush3.bf16.msra.mxu0 %v600_v21 }
  0x61   :  { %557 = vmatprep.subr.bf16.mxu0 %v719_v0 }
  0x64   :  { %558 = vmatpush3.bf16.msra.mxu0 %v601_v22 }
  0x65   :  { %559 = vmatprep.subr.bf16.mxu0 %v719_v0 }
  0x68   :  { %560 = vmatpush3.bf16.msra.mxu0 %v602_v33 }
  0x69   :  { %561 = vmatprep.subr.bf16.mxu0 %v719_v0 }
  0x6c   :  { %562 = vmatpush3.bf16.msra.mxu0 %v603_v34 }
  0x6d   :  { %563 = vmatprep.subr.bf16.mxu0 %v719_v0 }
  0x70   :  { %564 = vmatpush3.bf16.msra.mxu0 %v604_v35 }
 0x113   :  { %v196_v24 = vpop.f32.mrf.mxu0 }
 0x114   :  { %v197_v26 = vadd.f32 %v454_v23, %v196_v24 }
 0x115   :  { %v527_v25 = vpop.f32.mrf.mxu0 }
 0x116   :  { %v203_v30 = vmax.f32 %v197_v26, 0.0 }
 0x117   :  { %v199_v27 = vpop.f32.mrf.mxu0 }
 0x118   :  { %v200_v28 = vadd.f32 %v454_v23, %v199_v27 }
 0x119   :  { %v528_v29 = vpop.f32.mrf.mxu0 }
 0x11a   :  { %v204_v31 = vmax.f32 %v200_v28, 0.0 }
 0x11c   :  { %v205_v32 = vpack.c.bf16 %v204_v31, %v203_v30 }
 0x11e   :  { %546 = vmatmul.mubr.bf16.vlgmr.msra.gmra.mxu1 %v205_v32 }
 0x1de   :  { %v311_v37 = vpop.f32.mrf.mxu1 }
 0x1df   :  { %v312_v39 = vadd.f32 %v464_v36, %v311_v37 }
 0x1e0   :  { %v547_v38 = vpop.f32.mrf.mxu1 }
 0x1e1   :  { %v318_v43 = vmax.f32 %v312_v39, 0.0 }
 0x1e2   :  { %v314_v40 = vpop.f32.mrf.mxu1 }
 0x1e3   :  { %v315_v41 = vadd.f32 %v464_v36, %v314_v40 }
 0x1e4   :  { %v548_v42 = vpop.f32.mrf.mxu1 }
 0x1e5   :  { %v319_v44 = vmax.f32 %v315_v41, 0.0 }
 0x1e7   :  { %v320_v45 = vpack.c.bf16 %v319_v44, %v318_v43 }
 0x1e9   :  { %566 = vmatmul.mubr.bf16.vlgmr.msra.gmra.mxu0 %v320_v45 }
 0x2a9   :  { %v426_v47 = vpop.f32.mrf.mxu0 }
 0x2aa   :  { %v427_v48 = vadd.f32 %v473_v46, %v426_v47 }
 0x2ab   :  { %v567_v49 = vpop.f32.mrf.mxu0 }
 0x2ac   :  { %433 = vst [vmem:[#allocation10] sm:$0xff] %v427_v48 }
 0x2ad   :  { %v429_v50 = vpop.f32.mrf.mxu0 }
 0x2ae   :  { %v430_v51 = vadd.f32 %v473_v46, %v429_v50 }
 0x2af   :  { %v568_v52 = vpop.f32.mrf.mxu0 }
 0x2b0   :  { %434 = vst [vmem:[#allocation10 + $0x8] sm:$0xff] %v430_v51 }
 0x2b1   :  { %696 = shalt.err (!%p693_p10)
}
 0x2b2   :  { %s722_s26 = smov 128   ;;  %s723_s6 = smov 8  }
 0x2b3   :  { %446 = dma.vmem_to_hbm [thread:$0]  %s441_s25, 256, %s837_s7, [#allocation4], %s722_s26, %s722_s26, %s723_s6  }
 0x2b4   :  { %711 = dma.done.wait [#allocation4], 256  }
 0x2b5   :  { %712 = vsyncadd [#allocation4], 4294967040 }
 0x2b6   :  { %450 = vsyncpa [#allocation3], 1 }
 0x2b7   :  { %451 = vsyncpa [#allocation6], 1 }
 0x2b8   :  { %452 = vsyncpa [#allocation9], 1 }
 0x2b9   :  { %453 = vsyncpa [#allocation4], 1 }

</bundles_post_ra>
